<compile_context>
chip_gen: v5e
topology: v5e:2x2
jax: 0.10.0
libtpu: 0.0.40
codegen_flags: <defaults>
</compile_context>

<pallas_src>
import functools

import jax
import jax.numpy as jnp
from jax.experimental import pallas as pl
from jax.experimental.pallas import tpu as pltpu


def _ddc_kernel(src_ref, tgt_ref, wb_ref, bb_ref, wh_ref, bh_ref,
                clf_ref, loss_ref, dsum_ref,
                *, tile_rows, nc_pad, inv_n2):
    step = pl.program_id(0)

    # Zero the MMD row-sum accumulator on the first batch tile.
    @pl.when(step == 0)
    def _():
        dsum_ref[...] = jnp.zeros_like(dsum_ref)

    # Stack source+target rows so each weight is pushed through the MXU once
    # per grid step (2*tile_rows rows of M per matmul).
    x = jnp.concatenate([src_ref[...], tgt_ref[...]], axis=0)      # (2T, C*H*W)

    # Stand-in base_network: GAP + Linear fused into ONE MXU contraction
    # (1/(H*W) is folded into wb_eff by the wrapper), ReLU in f32.
    feats = jnp.dot(x, wb_ref[...], preferred_element_type=jnp.float32)
    feats = jnp.maximum(feats + bb_ref[...], 0.0)                  # (2T, F) f32
    feats_lp = feats.astype(wh_ref.dtype)                          # bf16 for MXU

    # Fused head: [classifier | bottleneck] in a single MXU dot. Columns
    # [0:nc_pad) are the classifier, [nc_pad:) the bottleneck; the split point
    # is a 128-lane boundary so both slices are aligned.
    head = jnp.dot(feats_lp, wh_ref[...],
                   preferred_element_type=jnp.float32) + bh_ref[...]

    # classifier_layer: keep the source half only; lane-dense output block.
    clf_ref[...] = head[:tile_rows, :nc_pad]

    # bottleneck_layer (Linear + ReLU): source and target halves.
    bn = jnp.maximum(head[:, nc_pad:], 0.0)                        # (2T, Bp) f32

    # adapt_loss('mmd'): mean(delta @ delta.T) == ||sum_rows(delta)||^2 / N^2.
    # Accumulate the per-tile row sum on the VPU (no Gram matrix, no transpose).
    # Padded batch rows give identical src/tgt bottleneck vectors -> delta == 0,
    # padded bottleneck lanes are exactly 0, so padding never pollutes the sum.
    delta = bn[:tile_rows] - bn[tile_rows:]                        # (T, Bp) f32
    dsum_ref[...] += jnp.sum(delta, axis=0, keepdims=True)         # (1, Bp)

    @pl.when(step == pl.num_programs(0) - 1)
    def _():
        s = dsum_ref[...]
        # Kept as a (1,1) VMEM block (robust multi-axis keepdims reduce + store).
        loss_ref[...] = jnp.sum(s * s, keepdims=True) * inv_n2     # (1, 1)


def ddcnet_forward(source, target, params, *, tile_rows=16,
                   compute_dtype=jnp.bfloat16):
    """source, target: (N, C, H, W).  Returns (source_clf (N, num_class), mmd_loss)."""
    if tile_rows % 16:
        raise ValueError("tile_rows must be a multiple of 16 (bf16 sublane tile)")
    N, C, H, W = source.shape
    HW = H * W
    CHW = C * HW
    feat_dim = params["wb"].shape[1]
    num_class = params["wc"].shape[1]
    bneck = params["wbn"].shape[1]

    # --- layout plumbing (done once by XLA, outside the kernel) ---
    n_pad = pl.cdiv(N, tile_rows) * tile_rows          # batch padded to the tile
    nc_pad = pl.cdiv(num_class, 128) * 128             # lane-dense clf output
    bn_pad = pl.cdiv(bneck, 128) * 128                 # lane-dense bottleneck

    def prep(x):
        x = x.reshape(N, CHW).astype(jnp.float32)
        return jnp.pad(x, ((0, n_pad - N), (0, 0))).astype(compute_dtype)

    src2 = prep(source)
    tgt2 = prep(target)

    # Stand-in backbone: GAP(HW) + Linear(C->F) == Linear(C*HW->F) with tied
    # weights; expand once here: wb_eff[c*HW + h, f] = wb[c, f] / HW.
    wb_eff = jnp.repeat(params["wb"].astype(jnp.float32) / HW, HW,
                        axis=0).astype(compute_dtype)              # (CHW, F)
    bb = params["bb"].astype(jnp.float32)                          # (1, F)

    # Fused head weight/bias: [classifier (nc_pad) | bottleneck (bn_pad)].
    wc_p = jnp.pad(params["wc"], ((0, 0), (0, nc_pad - num_class)))
    bc_p = jnp.pad(params["bc"], ((0, 0), (0, nc_pad - num_class)))
    wbn_p = jnp.pad(params["wbn"], ((0, 0), (0, bn_pad - bneck)))
    bbn_p = jnp.pad(params["bbn"], ((0, 0), (0, bn_pad - bneck)))
    w_head = jnp.concatenate([wc_p, wbn_p], axis=1).astype(compute_dtype)
    b_head = jnp.concatenate([bc_p, bbn_p], axis=1).astype(jnp.float32)

    n_tiles = n_pad // tile_rows
    row_spec = pl.BlockSpec((tile_rows, CHW), lambda i: (i, 0))

    def whole(a):  # weights/biases: whole-array block, resident across the grid
        return pl.BlockSpec(a.shape, lambda i: (0,) * a.ndim)

    kernel = functools.partial(_ddc_kernel, tile_rows=tile_rows, nc_pad=nc_pad,
                               inv_n2=1.0 / float(N * N))

    clf_pad, loss = pl.pallas_call(
        kernel,
        out_shape=(
            jax.ShapeDtypeStruct((n_pad, nc_pad), jnp.float32),
            jax.ShapeDtypeStruct((1, 1), jnp.float32),
        ),
        grid=(n_tiles,),
        in_specs=[row_spec, row_spec, whole(wb_eff), whole(bb),
                  whole(w_head), whole(b_head)],
        out_specs=(
            pl.BlockSpec((tile_rows, nc_pad), lambda i: (i, 0)),
            pl.BlockSpec((1, 1), lambda i: (0, 0)),
        ),
        scratch_shapes=[pltpu.VMEM((1, bn_pad), jnp.float32)],
        compiler_params=pltpu.CompilerParams(
            # Batch axis carries the MMD reduction (loss block index constant),
            # so it must be "arbitrary", not "parallel".
            dimension_semantics=("arbitrary",),
            vmem_limit_bytes=48 * 1024 * 1024,
        ),
    )(src2, tgt2, wb_eff, bb, w_head, b_head)

    return clf_pad[:N, :num_class], loss[0, 0]


def init_params(key, in_ch, feat_dim, num_class, bottleneck_width):
    k1, k2, k3 = jax.random.split(key, 3)
    # Stand-in backbone linear (deterministic from PRNGKey).
    wb = jax.random.normal(k1, (in_ch, feat_dim), jnp.float32) * 0.1
    bb = jnp.zeros((1, feat_dim), jnp.float32)
    # classifier_layer[0]: weight ~ N(0, 0.01), bias = 0.0  (stored transposed)
    wc = jax.random.normal(k2, (feat_dim, num_class), jnp.float32) * 0.01
    bc = jnp.zeros((1, num_class), jnp.float32)
    # bottleneck_layer[0]: weight ~ N(0, 0.005), bias = 0.1 (stored transposed)
    wbn = jax.random.normal(k3, (feat_dim, bottleneck_width), jnp.float32) * 0.005
    bbn = jnp.full((1, bottleneck_width), 0.1, jnp.float32)
    return dict(wb=wb, bb=bb, wc=wc, bc=bc, wbn=wbn, bbn=bbn)


def ref_forward(source, target, p):
    """Pure-JAX f32 reference of the module semantics (for correctness check)."""
    N, C, H, W = source.shape
    sp = source.reshape(N, C, -1).mean(-1)
    tp = target.reshape(N, C, -1).mean(-1)
    sf = jnp.maximum(sp @ p["wb"] + p["bb"], 0.0)
    tf = jnp.maximum(tp @ p["wb"] + p["bb"], 0.0)
    clf = sf @ p["wc"] + p["bc"]
    sb = jnp.maximum(sf @ p["wbn"] + p["bbn"], 0.0)
    tb = jnp.maximum(tf @ p["wbn"] + p["bbn"], 0.0)
    delta = sb - tb
    loss = jnp.mean(delta @ delta.T)
    return clf, loss


if __name__ == "__main__":
    N, C, H, W = 4, 4, 16, 16
    FEAT_DIM, NUM_CLASS, BOTTLENECK = 32, 5, 16

    key = jax.random.PRNGKey(0)
    k_src, k_tgt, k_par = jax.random.split(key, 3)
    source = jax.random.normal(k_src, (N, C, H, W), jnp.float32)
    target = jax.random.normal(k_tgt, (N, C, H, W), jnp.float32)
    params = init_params(k_par, C, FEAT_DIM, NUM_CLASS, BOTTLENECK)

    clf, loss = ddcnet_forward(source, target, params)
    jax.block_until_ready((clf, loss))

    clf_ref, loss_ref = ref_forward(source, target, params)
    assert clf.shape == (N, NUM_CLASS)
    # bf16 MXU inputs (f32 accumulation) -> tolerances loosened vs the f32 ref.
    assert jnp.allclose(clf, clf_ref, atol=2e-4, rtol=5e-2)
    assert jnp.allclose(loss, loss_ref, atol=5e-7, rtol=2e-1)

    print("KERNEL_OK")
</pallas_src>

<mosaic_0001>
module attributes {stable_mosaic.version = 11 : i64} {
  func.func @_ddc_kernel(%arg0: i32, %arg1: memref<16x1024xbf16, #tpu.memory_space<vmem>>, %arg2: memref<16x1024xbf16, #tpu.memory_space<vmem>>, %arg3: memref<1024x32xbf16, #tpu.memory_space<vmem>>, %arg4: memref<1x32xf32, #tpu.memory_space<vmem>>, %arg5: memref<32x256xbf16, #tpu.memory_space<vmem>>, %arg6: memref<1x256xf32, #tpu.memory_space<vmem>>, %arg7: memref<16x128xf32, #tpu.memory_space<vmem>>, %arg8: memref<1x1xf32, #tpu.memory_space<vmem>>, %arg9: memref<1x128xf32, #tpu.memory_space<vmem>>) attributes {dimension_semantics = [#tpu.dimension_semantics<arbitrary>], iteration_bounds = array<i64: 1>, scalar_prefetch = 0 : i64, scratch_operands = 1 : i64, tpu.core_type = #tpu.core_type<tc>, window_params = [{transform_indices = @transform_0, window_bounds = array<i64: 16, 1024>}, {transform_indices = @transform_1, window_bounds = array<i64: 16, 1024>}, {pipeline_mode = #tpu.pipeline_mode<synchronous>, transform_indices = @transform_2, window_bounds = array<i64: 1024, 32>}, {pipeline_mode = #tpu.pipeline_mode<synchronous>, transform_indices = @transform_3, window_bounds = array<i64: 1, 32>}, {pipeline_mode = #tpu.pipeline_mode<synchronous>, transform_indices = @transform_4, window_bounds = array<i64: 32, 256>}, {pipeline_mode = #tpu.pipeline_mode<synchronous>, transform_indices = @transform_5, window_bounds = array<i64: 1, 256>}, {transform_indices = @transform_6, window_bounds = array<i64: 16, 128>}, {pipeline_mode = #tpu.pipeline_mode<synchronous>, transform_indices = @transform_7, window_bounds = array<i64: 1, 1>}]} {
    %c0_i32 = arith.constant 0 : i32
    %0 = arith.cmpi eq, %arg0, %c0_i32 : i32
    %1 = arith.extui %0 : i1 to i32
    %c0_i32_0 = arith.constant 0 : i32
    %2 = arith.cmpi ne, %1, %c0_i32_0 : i32
    scf.if %2 {
      %cst_24 = arith.constant 0.000000e+00 : f32
      %35 = vector.broadcast %cst_24 : f32 to vector<1x128xf32>
      %c0_25 = arith.constant 0 : index
      %c0_26 = arith.constant 0 : index
      %36 = vector.load %arg9[%c0_25, %c0_26] : memref<1x128xf32, #tpu.memory_space<vmem>>, vector<1x128xf32>
      tpu.vector_store %arg9[%c0_25, %c0_26], %35 {strides = array<i32>} : memref<1x128xf32, #tpu.memory_space<vmem>>, vector<1x128xf32>,
    } else {
    }
    %c0 = arith.constant 0 : index
    %c0_1 = arith.constant 0 : index
    %3 = vector.load %arg1[%c0, %c0_1] : memref<16x1024xbf16, #tpu.memory_space<vmem>>, vector<16x1024xbf16>
    %c0_2 = arith.constant 0 : index
    %c0_3 = arith.constant 0 : index
    %4 = vector.load %arg2[%c0_2, %c0_3] : memref<16x1024xbf16, #tpu.memory_space<vmem>>, vector<16x1024xbf16>
    %5 = tpu.concatenate %3, %4 in 0 : vector<16x1024xbf16>, vector<16x1024xbf16> -> vector<32x1024xbf16>
    %c0_4 = arith.constant 0 : index
    %c0_5 = arith.constant 0 : index
    %6 = vector.load %arg3[%c0_4, %c0_5] : memref<1024x32xbf16, #tpu.memory_space<vmem>>, vector<1024x32xbf16>
    %cst = arith.constant dense<0.000000e+00> : vector<32x32xf32>
    %7 = tpu.matmul %5, %6, %cst {dimension_numbers = #tpu.dot_dimension_numbers<[1], [0], [0], [1], [0, 0, 1, 1], [], []>} : vector<32x1024xbf16>, vector<1024x32xbf16>, vector<32x32xf32> -> vector<32x32xf32>
    %c0_6 = arith.constant 0 : index
    %c0_7 = arith.constant 0 : index
    %8 = vector.load %arg4[%c0_6, %c0_7] : memref<1x32xf32, #tpu.memory_space<vmem>>, vector<1x32xf32>
    %9 = vector.broadcast %8 : vector<1x32xf32> to vector<32x32xf32>
    %10 = arith.addf %7, %9 : vector<32x32xf32>
    %cst_8 = arith.constant 0.000000e+00 : f32
    %11 = vector.broadcast %cst_8 : f32 to vector<32x32xf32>
    %12 = arith.maximumf %10, %11 : vector<32x32xf32>
    %13 = arith.truncf %12 : vector<32x32xf32> to vector<32x32xbf16>
    %c0_9 = arith.constant 0 : index
    %c0_10 = arith.constant 0 : index
    %14 = vector.load %arg5[%c0_9, %c0_10] : memref<32x256xbf16, #tpu.memory_space<vmem>>, vector<32x256xbf16>
    %cst_11 = arith.constant dense<0.000000e+00> : vector<32x256xf32>
    %15 = tpu.matmul %13, %14, %cst_11 {dimension_numbers = #tpu.dot_dimension_numbers<[1], [0], [0], [1], [0, 0, 1, 1], [], []>} : vector<32x32xbf16>, vector<32x256xbf16>, vector<32x256xf32> -> vector<32x256xf32>
    %c0_12 = arith.constant 0 : index
    %c0_13 = arith.constant 0 : index
    %16 = vector.load %arg6[%c0_12, %c0_13] : memref<1x256xf32, #tpu.memory_space<vmem>>, vector<1x256xf32>
    %17 = vector.broadcast %16 : vector<1x256xf32> to vector<32x256xf32>
    %18 = arith.addf %15, %17 : vector<32x256xf32>
    %19 = vector.extract_strided_slice %18 {offsets = [0, 0], sizes = [16, 128], strides = [1, 1]} : vector<32x256xf32> to vector<16x128xf32>
    %c0_14 = arith.constant 0 : index
    %c0_15 = arith.constant 0 : index
    %20 = vector.load %arg7[%c0_14, %c0_15] : memref<16x128xf32, #tpu.memory_space<vmem>>, vector<16x128xf32>
    tpu.vector_store %arg7[%c0_14, %c0_15], %19 {strides = array<i32>} : memref<16x128xf32, #tpu.memory_space<vmem>>, vector<16x128xf32>,
    %21 = vector.extract_strided_slice %18 {offsets = [0, 128], sizes = [32, 128], strides = [1, 1]} : vector<32x256xf32> to vector<32x128xf32>
    %cst_16 = arith.constant 0.000000e+00 : f32
    %22 = vector.broadcast %cst_16 : f32 to vector<32x128xf32>
    %23 = arith.maximumf %21, %22 : vector<32x128xf32>
    %24 = vector.extract_strided_slice %23 {offsets = [0, 0], sizes = [16, 128], strides = [1, 1]} : vector<32x128xf32> to vector<16x128xf32>
    %25 = vector.extract_strided_slice %23 {offsets = [16, 0], sizes = [16, 128], strides = [1, 1]} : vector<32x128xf32> to vector<16x128xf32>
    %26 = arith.subf %24, %25 : vector<16x128xf32>
    %c0_17 = arith.constant 0 : index
    %c0_18 = arith.constant 0 : index
    %27 = vector.load %arg9[%c0_17, %c0_18] : memref<1x128xf32, #tpu.memory_space<vmem>>, vector<1x128xf32>
    %cst_19 = arith.constant dense<0.000000e+00> : vector<128xf32>
    %28 = vector.multi_reduction <add>, %26, %cst_19 [0] : vector<16x128xf32> to vector<128xf32>
    %29 = vector.shape_cast %28 : vector<128xf32> to vector<1x128xf32>
    %30 = arith.addf %27, %29 : vector<1x128xf32>
    %c0_20 = arith.constant 0 : index
    %c0_21 = arith.constant 0 : index
    %31 = vector.load %arg9[%c0_20, %c0_21] : memref<1x128xf32, #tpu.memory_space<vmem>>, vector<1x128xf32>
    tpu.vector_store %arg9[%c0_20, %c0_21], %30 {strides = array<i32>} : memref<1x128xf32, #tpu.memory_space<vmem>>, vector<1x128xf32>,
    %c0_i32_22 = arith.constant 0 : i32
    %32 = arith.cmpi eq, %arg0, %c0_i32_22 : i32
    %33 = arith.extui %32 : i1 to i32
    %c0_i32_23 = arith.constant 0 : i32
    %34 = arith.cmpi ne, %33, %c0_i32_23 : i32
    scf.if %34 {
      %c0_24 = arith.constant 0 : index
      %c0_25 = arith.constant 0 : index
      %35 = vector.load %arg9[%c0_24, %c0_25] : memref<1x128xf32, #tpu.memory_space<vmem>>, vector<1x128xf32>
      %36 = arith.mulf %35, %35 : vector<1x128xf32>
      %37 = vector.shape_cast %36 : vector<1x128xf32> to vector<1x1x128xf32>
      %cst_26 = arith.constant dense<0.000000e+00> : vector<1xf32>
      %38 = vector.multi_reduction <add>, %37, %cst_26 [1, 2] : vector<1x1x128xf32> to vector<1xf32>
      %39 = vector.shape_cast %38 : vector<1xf32> to vector<1x1x1xf32>
      %40 = vector.extract %39[0, 0, 0] : f32 from vector<1x1x1xf32>
      %41 = vector.broadcast %40 : f32 to vector<1x1xf32>
      %cst_27 = arith.constant 6.250000e-02 : f32
      %42 = vector.broadcast %cst_27 : f32 to vector<1x1xf32>
      %43 = arith.mulf %41, %42 : vector<1x1xf32>
      %c0_28 = arith.constant 0 : index
      %c0_29 = arith.constant 0 : index
      %44 = vector.load %arg8[%c0_28, %c0_29] : memref<1x1xf32, #tpu.memory_space<vmem>>, vector<1x1xf32>
      tpu.vector_store %arg8[%c0_28, %c0_29], %43 {strides = array<i32>} : memref<1x1xf32, #tpu.memory_space<vmem>>, vector<1x1xf32>,
    } else {
    }
    return
  }
  func.func @transform_0(%arg0: i32) -> (i32, i32) {
    %c0_i32 = arith.constant 0 : i32
    %c0_i32_0 = arith.constant 0 : i32
    return %arg0, %c0_i32 : i32, i32
  }
  func.func @transform_1(%arg0: i32) -> (i32, i32) {
    %c0_i32 = arith.constant 0 : i32
    %c0_i32_0 = arith.constant 0 : i32
    return %arg0, %c0_i32 : i32, i32
  }
  func.func @transform_2(%arg0: i32) -> (i32, i32) {
    %c0_i32 = arith.constant 0 : i32
    %c0_i32_0 = arith.constant 0 : i32
    %c0_i32_1 = arith.constant 0 : i32
    return %c0_i32, %c0_i32_0 : i32, i32
  }
  func.func @transform_3(%arg0: i32) -> (i32, i32) {
    %c0_i32 = arith.constant 0 : i32
    %c0_i32_0 = arith.constant 0 : i32
    %c0_i32_1 = arith.constant 0 : i32
    return %c0_i32, %c0_i32_0 : i32, i32
  }
  func.func @transform_4(%arg0: i32) -> (i32, i32) {
    %c0_i32 = arith.constant 0 : i32
    %c0_i32_0 = arith.constant 0 : i32
    %c0_i32_1 = arith.constant 0 : i32
    return %c0_i32, %c0_i32_0 : i32, i32
  }
  func.func @transform_5(%arg0: i32) -> (i32, i32) {
    %c0_i32 = arith.constant 0 : i32
    %c0_i32_0 = arith.constant 0 : i32
    %c0_i32_1 = arith.constant 0 : i32
    return %c0_i32, %c0_i32_0 : i32, i32
  }
  func.func @transform_6(%arg0: i32) -> (i32, i32) {
    %c0_i32 = arith.constant 0 : i32
    %c0_i32_0 = arith.constant 0 : i32
    return %arg0, %c0_i32 : i32, i32
  }
  func.func @transform_7(%arg0: i32) -> (i32, i32) {
    %c0_i32 = arith.constant 0 : i32
    %c0_i32_0 = arith.constant 0 : i32
    %c0_i32_1 = arith.constant 0 : i32
    return %c0_i32, %c0_i32_0 : i32, i32
  }
}

</mosaic_0001>

<bundles_post_ra>
// kernel: tpu_custom_call.1
= control target key start
LH: loop header
LB: loop body
LE: loop exit
PB: predicated region body
PF: predicated region fallthrough
CT: control target
= control target key end

     0   :  { %13 = vsyncpa [#allocation4], 0  ;;  %s1809_s0 = inlined_call_operand.vmem [shape: bf16[16,1024], index: 0, kind: input, shape index: {}]   ;;  %s1810_s1 = inlined_call_operand.vmem [shape: bf16[16,1024], index: 1, kind: input, shape index: {}]   ;;  %s1811_s2 = inlined_call_operand.vmem [shape: bf16[1024,32], index: 2, kind: input, shape index: {}]   ;;  %s1812_s3 = inlined_call_operand.vmem [shape: f32[1,32], index: 3, kind: input, shape index: {}]   ;;  %s1813_s4 = inlined_call_operand.vmem [shape: bf16[32,256], index: 4, kind: input, shape index: {}]   ;;  %s1814_s5 = inlined_call_operand.vmem [shape: f32[1,256], index: 5, kind: input, shape index: {}]   ;;  %s1815_s6 = inlined_call_operand.hbm [shape: f32[16,128], index: 6, kind: output, shape index: {0}]   ;;  %s1816_s7 = inlined_call_operand.hbm [shape: f32[1,1], index: 7, kind: output, shape index: {1}]  }
   0x1   :  { %v1311_v0 = vld [vmem:[%s1811_s2 + $0x38] sm:$0xff]  ;;  %v1310_v4 = vld [vmem:[%s1811_s2 + $0x30] sm:$0xff]  ;;  %v1309_v8 = vld [vmem:[%s1811_s2 + $0x28] sm:$0xff] }
   0x2   :  { %v1319_v1 = vld [vmem:[%s1811_s2 + $0x78] sm:$0xff]  ;;  %645 = vmatpush.bf16.msra.mxu0 %v1311_v0  ;;  %v1318_v5 = vld [vmem:[%s1811_s2 + $0x70] sm:$0xff]  ;;  %v1317_v9 = vld [vmem:[%s1811_s2 + $0x68] sm:$0xff] }
   0x3   :  { %v1327_v2 = vld [vmem:[%s1811_s2 + $0xb8] sm:$0xff]  ;;  %664 = vmatpush.bf16.msra.mxu1 %v1319_v1  ;;  %v1326_v6 = vld [vmem:[%s1811_s2 + $0xb0] sm:$0xff]  ;;  %v1325_v10 = vld [vmem:[%s1811_s2 + $0xa8] sm:$0xff] }
   0x4   :  { %v1335_v3 = vld [vmem:[%s1811_s2 + $0xf8] sm:$0xff]  ;;  %683 = vmatpush.bf16.msra.mxu2 %v1327_v2  ;;  %v1334_v7 = vld [vmem:[%s1811_s2 + $0xf0] sm:$0xff]  ;;  %v1333_v11 = vld [vmem:[%s1811_s2 + $0xe8] sm:$0xff] }
   0x5   :  { %702 = vmatpush.bf16.msra.mxu3 %v1335_v3  ;;  %v1308_v12 = vld [vmem:[%s1811_s2 + $0x20] sm:$0xff]  ;;  %v1307_v16 = vld [vmem:[%s1811_s2 + $0x18] sm:$0xff]  ;;  %v1306_v20 = vld [vmem:[%s1811_s2 + $0x10] sm:$0xff] }
   0x6   :  { %646 = vmatpush.bf16.msra.mxu0 %v1310_v4  ;;  %v1316_v13 = vld [vmem:[%s1811_s2 + $0x60] sm:$0xff]  ;;  %v1315_v17 = vld [vmem:[%s1811_s2 + $0x58] sm:$0xff]  ;;  %v1314_v21 = vld [vmem:[%s1811_s2 + $0x50] sm:$0xff] }
   0x7   :  { %665 = vmatpush.bf16.msra.mxu1 %v1318_v5  ;;  %v1324_v14 = vld [vmem:[%s1811_s2 + $0xa0] sm:$0xff]  ;;  %v1323_v18 = vld [vmem:[%s1811_s2 + $0x98] sm:$0xff]  ;;  %v1322_v22 = vld [vmem:[%s1811_s2 + $0x90] sm:$0xff] }
   0x8   :  { %684 = vmatpush.bf16.msra.mxu2 %v1326_v6  ;;  %v1332_v15 = vld [vmem:[%s1811_s2 + $0xe0] sm:$0xff]  ;;  %v1331_v19 = vld [vmem:[%s1811_s2 + $0xd8] sm:$0xff]  ;;  %v1330_v23 = vld [vmem:[%s1811_s2 + $0xd0] sm:$0xff] }
   0x9   :  { %703 = vmatpush.bf16.msra.mxu3 %v1334_v7  ;;  %v1305_v24 = vld [vmem:[%s1811_s2 + $0x8] sm:$0xff]  ;;  %v1304_v28 = vld [vmem:[%s1811_s2] sm:$0xff] }
   0xa   :  { %647 = vmatpush.bf16.msra.mxu0 %v1309_v8  ;;  %v1313_v25 = vld [vmem:[%s1811_s2 + $0x48] sm:$0xff]  ;;  %v1312_v29 = vld [vmem:[%s1811_s2 + $0x40] sm:$0xff] }
   0xb   :  { %666 = vmatpush.bf16.msra.mxu1 %v1317_v9  ;;  %v1321_v26 = vld [vmem:[%s1811_s2 + $0x88] sm:$0xff]  ;;  %v950_v30 = vld [vmem:[%s1809_s0] sm:$0xf] }
   0xc   :  { %685 = vmatpush.bf16.msra.mxu2 %v1325_v10  ;;  %v1329_v27 = vld [vmem:[%s1811_s2 + $0xc8] sm:$0xff]  ;;  %v1320_v31 = vld [vmem:[%s1811_s2 + $0x80] sm:$0xff] }
   0xd   :  { %704 = vmatpush.bf16.msra.mxu3 %v1333_v11  ;;  %v1328_v32 = vld [vmem:[%s1811_s2 + $0xc0] sm:$0xff] }
   0xe   :  { %648 = vmatpush.bf16.msra.mxu0 %v1308_v12  ;;  %v1292_v33 = vld [vmem:[%s1809_s0 + $0x1c] sm:$0xf0] }
   0xf   :  { %667 = vmatpush.bf16.msra.mxu1 %v1316_v13 }
  0x10   :  { %686 = vmatpush.bf16.msra.mxu2 %v1324_v14 }
  0x11   :  { %705 = vmatpush.bf16.msra.mxu3 %v1332_v15 }
  0x12   :  { %649 = vmatpush.bf16.msra.mxu0 %v1307_v16 }
  0x13   :  { %668 = vmatpush.bf16.msra.mxu1 %v1315_v17 }
  0x14   :  { %687 = vmatpush.bf16.msra.mxu2 %v1323_v18 }
  0x15   :  { %706 = vmatpush.bf16.msra.mxu3 %v1331_v19 }
  0x16   :  { %650 = vmatpush.bf16.msra.mxu0 %v1306_v20 }
  0x17   :  { %669 = vmatpush.bf16.msra.mxu1 %v1314_v21 }
  0x18   :  { %688 = vmatpush.bf16.msra.mxu2 %v1322_v22 }
  0x19   :  { %707 = vmatpush.bf16.msra.mxu3 %v1330_v23 }
  0x1a   :  { %14 = vsyncpa [#allocation6], 0  ;;  %651 = vmatpush.bf16.msra.mxu0 %v1305_v24  ;;  %v1288_v34 = vld [vmem:[%s1809_s0 + $0x4] sm:$0xf]  ;;  %v958_v36 = vld [vmem:[%s1809_s0 + $0x8] sm:$0xf]  ;;  %v951_v42 = vor.u32 %v1292_v33, %v950_v30 }
  0x1b   :  { %670 = vmatpush.bf16.msra.mxu1 %v1313_v25  ;;  %v952_v35 = vld [vmem:[%s1809_s0 + $0x20] sm:$0xf0]  ;;  %v1293_v37 = vld [vmem:[%s1809_s0 + $0x24] sm:$0xf0]  ;;  %v1289_v38 = vld [vmem:[%s1809_s0 + $0xc] sm:$0xf] }
  0x1c   :  { %689 = vmatpush.bf16.msra.mxu2 %v1321_v26  ;;  %v960_v39 = vld [vmem:[%s1809_s0 + $0x28] sm:$0xf0]  ;;  %v1359_v40 = vld [vmem:[%s1811_s2 + $0x1b8] sm:$0xff]  ;;  %v955_v43 = vor.u32 %v1288_v34, %v952_v35  ;;  %v959_v44 = vor.u32 %v1293_v37, %v958_v36  ;;  %v1358_v48 = vld [vmem:[%s1811_s2 + $0x1b0] sm:$0xff]  ;;  %vm833_vm0 = vcmask 261120   ;;  %vm899_vm1 = vcmask 1040384  }
  0x1d   :  { %708 = vmatpush.bf16.msra.mxu3 %v1329_v27  ;;  %v1343_v41 = vld [vmem:[%s1811_s2 + $0x138] sm:$0xff]  ;;  %v963_v45 = vor.u32 %v1289_v38, %v960_v39  ;;  %v1342_v49 = vld [vmem:[%s1811_s2 + $0x130] sm:$0xff]  ;;  %v1357_v52 = vld [vmem:[%s1811_s2 + $0x1a8] sm:$0xff]  ;;  %s920_s25 = sshll.u32 %s1815_s6, 4  ;;  %s1438_s26 = smov 128   ;;  %vm912_vm2 = vcmask 0   ;;  %s921_s25 = int_to_ptr.hbm [resolvable:$true] %s920_s25 }
  0x1e   :  { %652 = vmatpush.bf16.msra.mxu0 %v1304_v28  ;;  %v1351_v46 = vld [vmem:[%s1811_s2 + $0x178] sm:$0xff]  ;;  %v1350_v50 = vld [vmem:[%s1811_s2 + $0x170] sm:$0xff]  ;;  %v1341_v53 = vld [vmem:[%s1811_s2 + $0x128] sm:$0xff]  ;;  %s1439_s27 = smov 8   ;;  %s1440_s28 = smov [#allocation5]  }
  0x1f   :  { %671 = vmatpush.bf16.msra.mxu1 %v1312_v29  ;;  %v1367_v47 = vld [vmem:[%s1811_s2 + $0x1f8] sm:$0xff]  ;;  %v1366_v51 = vld [vmem:[%s1811_s2 + $0x1f0] sm:$0xff]  ;;  %v1349_v54 = vld [vmem:[%s1811_s2 + $0x168] sm:$0xff]  ;;  %s932_s29 = sshll.u32 %s1440_s28, 4  ;;  %s933_s29 = int_to_ptr.vmem [resolvable:$true] %s932_s29 }
  0x20   :  { %690 = vmatpush.bf16.msra.mxu2 %v1320_v31  ;;  %v1365_v55 = vld [vmem:[%s1811_s2 + $0x1e8] sm:$0xff]  ;;  %v1356_v56 = vld [vmem:[%s1811_s2 + $0x1a0] sm:$0xff]  ;;  %v1355_v4 = vld [vmem:[%s1811_s2 + $0x198] sm:$0xff] }
  0x21   :  { %709 = vmatpush.bf16.msra.mxu3 %v1328_v32  ;;  %653 = vmatmul.bf16.vlgmr.msra.gmra.mxu0 %v951_v42  ;;  %v1340_v57 = vld [vmem:[%s1811_s2 + $0x120] sm:$0xff]  ;;  %v990_v0 = vld [vmem:[%s1810_s1 + $0x8] sm:$0xf]  ;;  %v1297_v2 = vld [vmem:[%s1810_s1 + $0xc] sm:$0xf] }
  0x22   :  { %721 = vmatpush.bf16.msrb.mxu0 %v1343_v41  ;;  %672 = vmatmul.bf16.vlgmr.msra.gmra.mxu1 %v955_v43  ;;  %v1348_v58 = vld [vmem:[%s1811_s2 + $0x160] sm:$0xff]  ;;  %v1301_v1 = vld [vmem:[%s1810_s1 + $0x24] sm:$0xf0]  ;;  %v992_v3 = vld [vmem:[%s1810_s1 + $0x28] sm:$0xf0] }
  0x23   :  { %691 = vmatmul.bf16.vlgmr.msra.gmra.mxu2 %v959_v44  ;;  %740 = vmatpush.bf16.msrb.mxu1 %v1351_v46  ;;  %v1364_v59 = vld [vmem:[%s1811_s2 + $0x1e0] sm:$0xff]  ;;  %v1339_v5 = vld [vmem:[%s1811_s2 + $0x118] sm:$0xff]  ;;  %v991_v8 = vor.u32 %v1301_v1, %v990_v0  ;;  %v995_v9 = vor.u32 %v1297_v2, %v992_v3  ;;  %v1354_v12 = vld [vmem:[%s1811_s2 + $0x190] sm:$0xff] }
  0x24   :  { %759 = vmatpush.bf16.msrb.mxu2 %v1359_v40  ;;  %710 = vmatmul.bf16.vlgmr.msra.gmra.mxu3 %v963_v45  ;;  %v982_v60 = vld [vmem:[%s1810_s1] sm:$0xf]  ;;  %v1296_v62 = vld [vmem:[%s1810_s1 + $0x4] sm:$0xf]  ;;  %v1347_v10 = vld [vmem:[%s1811_s2 + $0x158] sm:$0xff] }
  0x25   :  { %778 = vmatpush.bf16.msrb.mxu3 %v1367_v47  ;;  %v1300_v61 = vld [vmem:[%s1810_s1 + $0x1c] sm:$0xf0]  ;;  %v984_v63 = vld [vmem:[%s1810_s1 + $0x20] sm:$0xf0]  ;;  %v1363_v11 = vld [vmem:[%s1811_s2 + $0x1d8] sm:$0xff] }
  0x26   :  { %722 = vmatpush.bf16.msrb.mxu0 %v1342_v49  ;;  %v983_v6 = vor.u32 %v1300_v61, %v982_v60  ;;  %v987_v7 = vor.u32 %v1296_v62, %v984_v63  ;;  %v1338_v13 = vld [vmem:[%s1811_s2 + $0x110] sm:$0xff]  ;;  %v1353_v16 = vld [vmem:[%s1811_s2 + $0x188] sm:$0xff]  ;;  %v1352_v20 = vld [vmem:[%s1811_s2 + $0x180] sm:$0xff] }
  0x27   :  { %741 = vmatpush.bf16.msrb.mxu1 %v1350_v50  ;;  %v1346_v14 = vld [vmem:[%s1811_s2 + $0x150] sm:$0xff]  ;;  %v1337_v17 = vld [vmem:[%s1811_s2 + $0x108] sm:$0xff]  ;;  %v1336_v21 = vld [vmem:[%s1811_s2 + $0x100] sm:$0xff] }
  0x28   :  { %760 = vmatpush.bf16.msrb.mxu2 %v1358_v48  ;;  %v1362_v15 = vld [vmem:[%s1811_s2 + $0x1d0] sm:$0xff]  ;;  %v1345_v18 = vld [vmem:[%s1811_s2 + $0x148] sm:$0xff]  ;;  %v1344_v22 = vld [vmem:[%s1811_s2 + $0x140] sm:$0xff] }
  0x29   :  { %779 = vmatpush.bf16.msrb.mxu3 %v1366_v51  ;;  %v1361_v19 = vld [vmem:[%s1811_s2 + $0x1c8] sm:$0xff]  ;;  %v1360_v23 = vld [vmem:[%s1811_s2 + $0x1c0] sm:$0xff]  ;;  %v966_v24 = vld [vmem:[%s1809_s0 + $0x10] sm:$0xf]  ;;  %s934_s2 = sshll.u32 %s1816_s7, 4  ;;  %s935_s2 = int_to_ptr.hbm [resolvable:$true] %s934_s2 }
  0x2a   :  { %723 = vmatpush.bf16.msrb.mxu0 %v1341_v53  ;;  %v1294_v25 = vld [vmem:[%s1809_s0 + $0x2c] sm:$0xf0]  ;;  %v1290_v26 = vld [vmem:[%s1809_s0 + $0x14] sm:$0xf]  ;;  %v974_v28 = vld [vmem:[%s1809_s0 + $0x18] sm:$0xf] }
  0x2b   :  { %742 = vmatpush.bf16.msrb.mxu1 %v1349_v54  ;;  %v968_v27 = vld [vmem:[%s1809_s0 + $0x30] sm:$0xf0]  ;;  %v1295_v29 = vld [vmem:[%s1809_s0 + $0x34] sm:$0xf0]  ;;  %v1291_v30 = vld [vmem:[%s1809_s0 + $0x1c] sm:$0xf]  ;;  %v967_v32 = vor.u32 %v1294_v25, %v966_v24 }
  0x2c   :  { %761 = vmatpush.bf16.msrb.mxu2 %v1357_v52  ;;  %v976_v31 = vld [vmem:[%s1809_s0 + $0x38] sm:$0xf0]  ;;  %v971_v33 = vor.u32 %v1290_v26, %v968_v27  ;;  %v975_v34 = vor.u32 %v1295_v29, %v974_v28  ;;  %v998_v36 = vld [vmem:[%s1810_s1 + $0x10] sm:$0xf]  ;;  %v1298_v38 = vld [vmem:[%s1810_s1 + $0x14] sm:$0xf] }
  0x2d   :  { %780 = vmatpush.bf16.msrb.mxu3 %v1365_v55  ;;  %v979_v35 = vor.u32 %v1291_v30, %v976_v31  ;;  %v1302_v37 = vld [vmem:[%s1810_s1 + $0x2c] sm:$0xf0]  ;;  %v1000_v39 = vld [vmem:[%s1810_s1 + $0x30] sm:$0xf0]  ;;  %v1006_v40 = vld [vmem:[%s1810_s1 + $0x18] sm:$0xf] }
  0x2e   :  { %724 = vmatpush.bf16.msrb.mxu0 %v1340_v57  ;;  %v1303_v41 = vld [vmem:[%s1810_s1 + $0x34] sm:$0xf0]  ;;  %v1299_v42 = vld [vmem:[%s1810_s1 + $0x1c] sm:$0xf]  ;;  %v999_v44 = vor.u32 %v1302_v37, %v998_v36  ;;  %v1003_v45 = vor.u32 %v1298_v38, %v1000_v39  ;;  %v1370_v54 = vld [vmem:[%s1813_s4 + $0x14] sm:$0xf] }
  0x2f   :  { %743 = vmatpush.bf16.msrb.mxu1 %v1348_v58  ;;  %v1008_v43 = vld [vmem:[%s1810_s1 + $0x38] sm:$0xf0]  ;;  %v1007_v46 = vor.u32 %v1303_v41, %v1006_v40  ;;  %v1371_v60 = vld [vmem:[%s1813_s4 + $0x14] sm:$0xf0]  ;;  %v1270_v0 = vld [vmem:[%s1813_s4] sm:$0xf] }
  0x30   :  { %762 = vmatpush.bf16.msrb.mxu2 %v1356_v56  ;;  %v1011_v47 = vor.u32 %v1299_v42, %v1008_v43  ;;  %v1280_v55 = vld [vmem:[%s1813_s4 + $0x18] sm:$0xf0]  ;;  %v1369_v1 = vld [vmem:[%s1813_s4 + $0x4] sm:$0xf0]  ;;  %v1368_v2 = vld [vmem:[%s1813_s4 + $0x4] sm:$0xf] }
  0x31   :  { %781 = vmatpush.bf16.msrb.mxu3 %v1364_v59  ;;  %658 = vmatmul.bf16.gmra.mxu0 %v983_v6  ;;  %v1283_v56 = vor.u32 %v1370_v54, %v1280_v55  ;;  %v1278_v59 = vld [vmem:[%s1813_s4 + $0x10] sm:$0xf]  ;;  %v1383_v3 = vld [vmem:[%s1812_s3] ss:$0 sm:$0xff] }
  0x32   :  { %725 = vmatpush.bf16.msrb.mxu0 %v1339_v5  ;;  %677 = vmatmul.bf16.gmra.mxu1 %v987_v7  ;;  %v1279_v63 = vor.u32 %v1371_v60, %v1278_v59  ;;  %v1272_v5 = vld [vmem:[%s1813_s4 + $0x8] sm:$0xf0] }
  0x33   :  { %696 = vmatmul.bf16.gmra.mxu2 %v991_v8  ;;  %744 = vmatpush.bf16.msrb.mxu1 %v1347_v10  ;;  %v1275_v6 = vor.u32 %v1368_v2, %v1272_v5  ;;  %v1436_v5 = vmov 0.0  }
  0x34   :  { %763 = vmatpush.bf16.msrb.mxu2 %v1355_v4  ;;  %715 = vmatmul.bf16.gmra.mxu3 %v995_v9  ;;  %v1271_v4 = vor.u32 %v1369_v1, %v1270_v0  ;;  %32 = vst [vmem:[#allocation2] sm:$0x1] %v1436_v5 }
  0x35   :  { %782 = vmatpush.bf16.msrb.mxu3 %v1363_v11 }
  0x36   :  { %726 = vmatpush.bf16.msrb.mxu0 %v1338_v13 }
  0x37   :  { %745 = vmatpush.bf16.msrb.mxu1 %v1346_v14 }
  0x38   :  { %764 = vmatpush.bf16.msrb.mxu2 %v1354_v12 }
  0x39   :  { %783 = vmatpush.bf16.msrb.mxu3 %v1362_v15 }
  0x3a   :  { %727 = vmatpush.bf16.msrb.mxu0 %v1337_v17 }
  0x3b   :  { %746 = vmatpush.bf16.msrb.mxu1 %v1345_v18 }
  0x3c   :  { %765 = vmatpush.bf16.msrb.mxu2 %v1353_v16 }
  0x3d   :  { %784 = vmatpush.bf16.msrb.mxu3 %v1361_v19 }
  0x3e   :  { %728 = vmatpush.bf16.msrb.mxu0 %v1336_v21 }
  0x3f   :  { %747 = vmatpush.bf16.msrb.mxu1 %v1344_v22 }
  0x40   :  { %766 = vmatpush.bf16.msrb.mxu2 %v1352_v20 }
  0x41   :  { %785 = vmatpush.bf16.msrb.mxu3 %v1360_v23  ;;  %729 = vmatmul.bf16.vlgmr.msrb.gmra.mxu0 %v967_v32 }
  0x42   :  { %748 = vmatmul.bf16.vlgmr.msrb.gmra.mxu1 %v971_v33  ;;  %846 = vmatpush.bf16.msra.mxu0 %v1279_v63 }
  0x43   :  { %767 = vmatmul.bf16.vlgmr.msrb.gmra.mxu2 %v975_v34  ;;  %863 = vmatpush.bf16.msra.mxu1 %v1283_v56 }
  0x44   :  { %786 = vmatmul.bf16.vlgmr.msrb.gmra.mxu3 %v979_v35  ;;  %1372 = vmatpush.bf16.msra.mxu2 %v1279_v63 }
  0x45   :  { %1374 = vmatpush.bf16.msra.mxu3 %v1283_v56 }
  0x46   :  { %847 = vmatpush.bf16.msra.mxu0 %v1271_v4 }
  0x47   :  { %864 = vmatpush.bf16.msra.mxu1 %v1275_v6 }
  0x48   :  { %1373 = vmatpush.bf16.msra.mxu2 %v1271_v4 }
  0x49   :  { %1375 = vmatpush.bf16.msra.mxu3 %v1275_v6 }
  0x51   :  { %734 = vmatmul.bf16.gmra.mxu0 %v999_v44 }
  0x52   :  { %753 = vmatmul.bf16.gmra.mxu1 %v1003_v45 }
  0x53   :  { %772 = vmatmul.bf16.gmra.mxu2 %v1007_v46 }
  0x54   :  { %791 = vmatmul.bf16.gmra.mxu3 %v1011_v47 }
  0x9e   :  { %v654_v48 = vpop.f32.mrf.mxu0 }
  0x9f   :  { %v673_v49 = vpop.f32.mrf.mxu1  ;;  %v655_v9 = vadd.f32 %v1383_v3, %v654_v48 }
  0xa1   :  { %v674_v12 = vadd.f32 %v673_v49, %v655_v9 }
  0xa6   :  { %v692_v50 = vpop.f32.mrf.mxu2  ;;  %v656_v52 = vpop.f32.mrf.mxu0 }
  0xa7   :  { %v711_v51 = vpop.f32.mrf.mxu3  ;;  %v675_v53 = vpop.f32.mrf.mxu1  ;;  %v657_v13 = vadd.f32 %v1383_v3, %v656_v52  ;;  %v693_v16 = vadd.f32 %v692_v50, %v674_v12 }
  0xa9   :  { %v676_v19 = vadd.f32 %v675_v53, %v657_v13  ;;  %v712_v20 = vadd.f32 %v711_v51, %v693_v16 }
  0xae   :  { %v694_v57 = vpop.f32.mrf.mxu2  ;;  %v659_v61 = vpop.f32.mrf.mxu0 }
  0xaf   :  { %v713_v58 = vpop.f32.mrf.mxu3  ;;  %v678_v62 = vpop.f32.mrf.mxu1  ;;  %v695_v21 = vadd.f32 %v694_v57, %v676_v19  ;;  %v660_v25 = vadd.f32 %v1383_v3, %v659_v61 }
  0xb1   :  { %v714_v24 = vadd.f32 %v713_v58, %v695_v21  ;;  %v679_v31 = vadd.f32 %v678_v62, %v660_v25 }
  0xb6   :  { %v697_v7 = vpop.f32.mrf.mxu2  ;;  %v661_v10 = vpop.f32.mrf.mxu0 }
  0xb7   :  { %v716_v8 = vpop.f32.mrf.mxu3  ;;  %v680_v11 = vpop.f32.mrf.mxu1  ;;  %v662_v33 = vadd.f32 %v1383_v3, %v661_v10  ;;  %v698_v36 = vadd.f32 %v697_v7, %v679_v31  ;;  %v807_v3 = vld [vmem:[%s1814_s5] sm:$0x3]  ;;  %s1437_s5 = smov [#allocation3]  }
  0xb8   :  { %v809_v4 = vperm.slane %v807_v3, 0  ;;  %v810_v13 = vperm.slane %v807_v3, 1  ;;  %s918_s22 = sshll.u32 %s1437_s5, 4  ;;  %s919_s22 = int_to_ptr.vmem [resolvable:$true] %s918_s22 }
  0xb9   :  { %v681_v41 = vadd.f32 %v680_v11, %v662_v33  ;;  %v717_v44 = vadd.f32 %v716_v8, %v698_v36  ;;  %v884_v33 = vld [vmem:[#allocation2] sm:$0x1] }
  0xbe   :  { %v699_v14 = vpop.f32.mrf.mxu2  ;;  %v730_v17 = vpop.f32.mrf.mxu0 }
  0xbf   :  { %v718_v15 = vpop.f32.mrf.mxu3  ;;  %v749_v18 = vpop.f32.mrf.mxu1  ;;  %v731_v22 = vadd.f32 %v730_v17, %v712_v20  ;;  %v700_v45 = vadd.f32 %v699_v14, %v681_v41 }
  0xc1   :  { %v750_v29 = vadd.f32 %v749_v18, %v731_v22  ;;  %v719_v51 = vadd.f32 %v718_v15, %v700_v45 }
  0xc6   :  { %v768_v23 = vpop.f32.mrf.mxu2  ;;  %v732_v27 = vpop.f32.mrf.mxu0 }
  0xc7   :  { %v787_v26 = vpop.f32.mrf.mxu3  ;;  %v751_v28 = vpop.f32.mrf.mxu1  ;;  %v733_v30 = vadd.f32 %v732_v27, %v714_v24  ;;  %v769_v32 = vadd.f32 %v768_v23, %v750_v29 }
  0xc9   :  { %v752_v34 = vadd.f32 %v751_v28, %v733_v30  ;;  %v788_v37 = vadd.f32 %v787_v26, %v769_v32 }
  0xcb   :  { %v797_v46 = vmax.f32 %v788_v37, 0.0 }
  0xce   :  { %v770_v35 = vpop.f32.mrf.mxu2  ;;  %v735_v40 = vpop.f32.mrf.mxu0 }
  0xcf   :  { %v771_v38 = vadd.f32 %v770_v35, %v752_v34  ;;  %v789_v39 = vpop.f32.mrf.mxu3  ;;  %v754_v43 = vpop.f32.mrf.mxu1  ;;  %v736_v49 = vadd.f32 %v735_v40, %v717_v44 }
  0xd1   :  { %v790_v42 = vadd.f32 %v789_v39, %v771_v38  ;;  %v755_v54 = vadd.f32 %v754_v43, %v736_v49 }
  0xd3   :  { %v798_v47 = vmax.f32 %v790_v42, 0.0 }
  0xd5   :  { %v801_v48 = vpack.c.bf16 %v798_v47, %v797_v46 }
  0xd6   :  { %v773_v50 = vpop.f32.mrf.mxu2  ;;  %v737_v53 = vpop.f32.mrf.mxu0 }
  0xd7   :  { %v792_v52 = vpop.f32.mrf.mxu3  ;;  %1284 = vmatmul.msk.bf16.vlgmr.msra.gmra.mxu0 %vm833_vm0, %v801_v48  ;;  %1286 = vmatmul.msk.bf16.vlgmr.msra.gmra.mxu1 %vm833_vm0, %v801_v48  ;;  %v738_v55 = vadd.f32 %v737_v53, %v719_v51  ;;  %v774_v56 = vadd.f32 %v773_v50, %v755_v54  ;;  %v756_v57 = vpop.f32.mrf.mxu1 }
  0xd9   :  { %v757_v58 = vadd.f32 %v756_v57, %v738_v55  ;;  %v793_v60 = vadd.f32 %v792_v52, %v774_v56 }
  0xdb   :  { %v799_v0 = vmax.f32 %v793_v60, 0.0 }
  0xde   :  { %v775_v59 = vpop.f32.mrf.mxu2 }
  0xdf   :  { %v776_v61 = vadd.f32 %v775_v59, %v757_v58  ;;  %v794_v62 = vpop.f32.mrf.mxu3 }
  0xe1   :  { %v795_v63 = vadd.f32 %v794_v62, %v776_v61 }
  0xe3   :  { %v800_v1 = vmax.f32 %v795_v63, 0.0 }
  0xe5   :  { %v802_v2 = vpack.c.bf16 %v800_v1, %v799_v0 }
  0xe7   :  { %1285 = vmatmul.msk.bf16.vlgmr.msra.gmra.mxu2 %vm833_vm0, %v802_v2  ;;  %1287 = vmatmul.msk.bf16.vlgmr.msra.gmra.mxu3 %vm833_vm0, %v802_v2 }
 0x154   :  { %v849_v6 = vpop.f32.mrf.mxu0  ;;  %v866_v10 = vpop.f32.mrf.mxu1 }
 0x155   :  { %v850_v7 = vadd.f32 %v849_v6, %v809_v4  ;;  %v867_v16 = vadd.f32 %v866_v10, %v810_v13 }
 0x157   :  { %876 = vst [vmem:[#allocation3] sm:$0xff] %v850_v7  ;;  %v878_v22 = vmax.f32 %v867_v16, 0.0 }
 0x15c   :  { %v851_v8 = vpop.f32.mrf.mxu0  ;;  %v868_v14 = vpop.f32.mrf.mxu1 }
 0x15d   :  { %v852_v9 = vadd.f32 %v851_v8, %v809_v4  ;;  %v869_v17 = vadd.f32 %v868_v14, %v810_v13 }
 0x15f   :  { %877 = vst [vmem:[#allocation3 + $0x8] sm:$0xff] %v852_v9  ;;  %v879_v23 = vmax.f32 %v869_v17, 0.0 }
 0x160   :  { %926 = dma.vmem_to_hbm [thread:$0]  %s919_s22, 256, %s921_s25, [#allocation4], %s1438_s26, %s1438_s26, %s1439_s27  }
 0x16a   :  { %v854_v11 = vpop.f32.mrf.mxu2  ;;  %v871_v12 = vpop.f32.mrf.mxu3 }
 0x16b   :  { %v872_v15 = vadd.f32 %v871_v12, %v810_v13 }
 0x16d   :  { %v880_v20 = vmax.f32 %v872_v15, 0.0 }
 0x16f   :  { %v882_v25 = vsub.f32 %v878_v22, %v880_v20 }
 0x172   :  { %v855_v18 = vpop.f32.mrf.mxu2  ;;  %v873_v19 = vpop.f32.mrf.mxu3 }
 0x173   :  { %v874_v21 = vadd.f32 %v873_v19, %v810_v13 }
 0x175   :  { %v881_v24 = vmax.f32 %v874_v21, 0.0 }
 0x177   :  { %v883_v26 = vsub.f32 %v879_v23, %v881_v24 }
 0x179   :  { %v885_v27 = vadd.f32 %v883_v26, %v882_v25 }
 0x17b   :  { %v886_v28 = vrot.slane %v885_v27, 4 }
 0x17d   :  { %v887_v29 = vadd.f32 %v886_v28, %v885_v27 }
 0x17f   :  { %v888_v30 = vrot.slane %v887_v29, 2 }
 0x181   :  { %v889_v31 = vadd.f32 %v888_v30, %v887_v29 }
 0x183   :  { %v890_v32 = vrot.slane %v889_v31, 1 }
 0x185   :  { %v891_v34 = vadd.f32 %v890_v32, %v889_v31 }
 0x187   :  { %v892_v35 = vadd.f32 %v891_v34, %v884_v33 }
 0x189   :  { %893 = vst [vmem:[#allocation2] sm:$0x1] %v892_v35 }
 0x190   :  { %v897_v36 = vld [vmem:[#allocation2] sm:$0x1] }
 0x191   :  { %v898_v37 = vmul.f32 %v897_v36, %v897_v36 }
 0x193   :  { %v900_v38 = vsel %vm899_vm1, %v898_v37, 0.0 }
 0x194   :  { %901 = vadd.xlane.f32.xlu0 %v900_v38 }
 0x207   :  { %v902_v39 = vpop.xlane.xlu0 %901 }
 0x208   :  { %v903_v40 = vrot.slane %v902_v39, 4 }
 0x20a   :  { %v904_v41 = vadd.f32 %v903_v40, %v902_v39 }
 0x20c   :  { %v905_v42 = vrot.slane %v904_v41, 2 }
 0x20e   :  { %v906_v43 = vadd.f32 %v905_v42, %v904_v41 }
 0x210   :  { %v907_v44 = vrot.slane %v906_v43, 1 }
 0x212   :  { %v908_v45 = vadd.f32 %v907_v44, %v906_v43 }
 0x214   :  { %1376 = vpush %v908_v45 }
 0x245   :  { %s1377_s6 = spop %1376 }
 0x246   :  { %v910_v46 = vstv %s1377_s6 }
 0x247   :  { %v911_v47 = vmul.f32 0.0625, %v910_v46 }
 0x249   :  { %913 = vst.msk [vmem:[#allocation5] sm:$0x1] %vm912_vm2, %v911_v47 }
 0x24a   :  { %937 = dma.vmem_to_hbm [thread:$0]  %s933_s29, 16, %s935_s2, [#allocation6]  }
 0x24b   :  { %1432 = dma.done.wait [#allocation4], 256  }
 0x24c   :  { %1433 = vsyncadd [#allocation4], 4294967040 }
 0x24d   :  { %1434 = dma.done.wait [#allocation6], 16  }
 0x24e   :  { %1435 = vsyncadd [#allocation6], 4294967280 }
 0x24f   :  { %946 = vsyncpa [#allocation4], 1 }
 0x250   :  { %947 = vsyncpa [#allocation6], 1 }

</bundles_post_ra>
